<compile_context>
chip_gen: v7x
topology: tpu7x:2x2x1
jax: 0.10.0
libtpu: 0.0.40
codegen_flags: <defaults>
</compile_context>

<pallas_src>
import functools

import jax
import jax.numpy as jnp
from jax.experimental import pallas as pl
from jax.experimental.pallas import tpu as pltpu


def _wsa_kernel(x_ref, w1bd_ref, b1t_ref, w2bd_ref, rot_ref, gmat_ref,
                rexp_ref, gsum_ref, o_ref, *, nsteps, score_dtype):
    """One grid step: TMr folded rows, each holding k original rows lane-packed."""
    x = x_ref[...]                                                        # (TMr, k*N*D)

    # --- attention MLP for all k*N slots at once (block-diagonal weights) ---
    xs = x.astype(score_dtype)
    h = jnp.dot(xs, w1bd_ref[...], preferred_element_type=jnp.float32)   # (TMr, k*N*H)
    h = jnp.maximum(h + b1t_ref[...], 0.0)
    s = jnp.dot(h, w2bd_ref[...], preferred_element_type=jnp.float32)    # (TMr, k*N)

    # --- exact per-group (size N) max via doubling within-group rotations ---
    m = s
    for p in range(nsteps):                                              # static unroll
        rot = jnp.dot(m, rot_ref[p], preferred_element_type=jnp.float32)
        m = jnp.maximum(m, rot)

    # --- group softmax over each group of N lanes (b2 dropped: shift-invariant) ---
    e = jnp.exp(s - m)
    denom = jnp.dot(e, gmat_ref[...], preferred_element_type=jnp.float32)  # per-lane group sum
    w = e * pl.reciprocal(denom, approx=True)                              # (TMr, k*N)

    # --- weighted sum over the N slots of each group, kept lane-dense ---
    w_full = jnp.dot(w, rexp_ref[...], preferred_element_type=jnp.float32)  # (TMr, k*N*D)
    xw = x * w_full.astype(x.dtype)                                         # VPU
    out = jnp.dot(xw, gsum_ref[...], preferred_element_type=jnp.float32)    # (TMr, k*D)
    o_ref[...] = out.astype(o_ref.dtype)


def _vmem_limit_bytes():
    """Per-generation scoped-VMEM limit: ~48 MiB on 64-MiB chips (v7x), 64 MiB on 128-MiB chips."""
    cap = 64 * 1024 * 1024  # conservative default (v7x physical VMEM)
    try:
        c = getattr(pltpu.get_tpu_info(), "vmem_capacity_bytes", None)
        if c:
            cap = int(c)
    except Exception:
        pass
    return max(32 << 20, min(64 << 20, cap - (16 << 20)))


def _use_bf16_scores(x_dtype):
    """bf16 score matmuls on v5e keep the Nx-inflated MXU work off the critical path."""
    if jnp.dtype(x_dtype) != jnp.float32:
        return False
    try:
        kind = jax.devices()[0].device_kind.lower()
    except Exception:
        return False
    return ("v5 lite" in kind) or ("v5e" in kind) or ("v5litepod" in kind)


def _choose_rows(mr, per_row_bytes, x_row_bytes, vmem_budget_bytes, target_block_bytes):
    """Folded rows per grid step: biggest multiple-of-8 exact divisor of `mr`
    within the VMEM / block-size budget, with >= 2 grid steps when possible so
    megacore (v7x) has work for both TensorCores.  Returns (rows, pad_rows)."""
    cap = min(vmem_budget_bytes // max(1, per_row_bytes),
              target_block_bytes // max(1, x_row_bytes))
    cap = max(8, int(cap))
    if mr < 16:
        return mr, 0                                   # tiny: one full-extent block
    t = max(8, (min(cap, mr // 2) // 8) * 8)           # >= 2 steps
    for r in range(t, 7, -8):                          # exact divisor -> zero padding
        if mr % r == 0:
            return r, 0
    if mr <= cap:                                      # ragged mr: one full block beats a pad copy
        return mr, 0
    return t, (-mr) % t                                # rare fallback: pad (whole-array copy)


def weighted_sum_aggregation(x, w1, b1, w2, b2, *,
                             target_block_bytes=8 << 20, score_dtype=None):
    """x: (B, S, N, D); w1: (D, H); b1: (H,); w2: (H, 1); b2: (1,)."""
    B, S, N, D = x.shape
    H = w1.shape[1]
    M = B * S
    x_isz = jnp.dtype(x.dtype).itemsize

    if score_dtype is None:
        score_dtype = jnp.bfloat16 if _use_bf16_scores(x.dtype) else x.dtype

    # Fold k original rows into one lane-dense row so the output block is
    # >= 128 lanes wide (unmasked stores, no padded VMEM out buffer).
    k = 128 // D if (D < 128 and 128 % D == 0) else 1
    while k > 1 and M % k:
        k //= 2
    while k > 1 and (k * N * D > 2048 or k * N * H > 1024):   # keep constants small
        k //= 2
    # TODO(synk): for very large N (N*D >~ 8192) replace the block-diagonal score
    # matmul with a per-slot loop; constants/flops grow ~N^2 / ~Nx otherwise.

    Mr = M // k
    W = k * N * D            # lanes per folded x row
    KNH = k * N * H
    KN = k * N
    KD = k * D

    # (B, S, N, D) -> (Mr, k*N*D): contiguous row-major reshape (no data movement).
    xf = x.reshape(Mr, W)

    f32 = jnp.float32
    eye_kn = jnp.eye(KN, dtype=f32)
    w1bd = jnp.kron(eye_kn, w1.astype(f32)).astype(score_dtype)       # (W, KNH)
    b1t = jnp.tile(b1.astype(f32), KN).reshape(1, KNH)                # (1, KNH)
    w2bd = jnp.kron(eye_kn, w2.astype(f32))                           # (KNH, KN)

    # Per-group softmax helpers: within-group cyclic rotations (for exact group
    # max via doubling) and the group-sum matrix.
    nsteps = max(1, (N - 1).bit_length())                             # ceil(log2 N), >=1
    idx = jnp.arange(KN)
    grp, pos = idx // N, idx % N
    rots = []
    for p in range(nsteps):
        sh = 1 << p
        src = grp * N + (pos + sh) % N
        rots.append((idx[:, None] == src[None, :]).astype(f32))       # rotated = m @ P
    rot = jnp.stack(rots, axis=0)                                     # (nsteps, KN, KN)
    gmat = jnp.kron(jnp.eye(k, dtype=f32), jnp.ones((N, N), f32))     # (KN, KN)

    rexp = jnp.kron(eye_kn, jnp.ones((1, D), f32))                    # (KN, W)
    gsum = jnp.kron(jnp.eye(k, dtype=f32),
                    jnp.kron(jnp.ones((N, 1), f32),
                             jnp.eye(D, dtype=f32))).astype(x.dtype)  # (W, KD)
    del b2  # softmax(s + b2) == softmax(s): the scalar bias cancels exactly.

    const_bytes = sum(int(a.size) * jnp.dtype(a.dtype).itemsize
                      for a in (w1bd, b1t, w2bd, rot, gmat, rexp, gsum))
    vmem_limit = _vmem_limit_bytes()
    budget = max(2 << 20, int(0.70 * vmem_limit) - 2 * const_bytes)
    per_row = (2 * W * x_isz           # x block, double-buffered
               + 2 * KD * x_isz        # out block, double-buffered
               + W * 4 + W * x_isz     # w_full (f32) + xw temporaries
               + KNH * 4               # h
               + 8 * KN * 4)           # s / m / e / denom / w + slack
    TMr, pad = _choose_rows(Mr, per_row, W * x_isz, budget, target_block_bytes)

    if pad:  # rare fallback: no aligned exact divisor and Mr too large for one block
        xf = jnp.concatenate([xf, jnp.zeros((pad, W), xf.dtype)], axis=0)
    Mp = Mr + pad
    steps = Mp // TMr

    kernel = functools.partial(_wsa_kernel, nsteps=nsteps, score_dtype=score_dtype)

    out = pl.pallas_call(
        kernel,
        out_shape=jax.ShapeDtypeStruct((Mp, KD), x.dtype),
        grid_spec=pltpu.PrefetchScalarGridSpec(
            num_scalar_prefetch=0,
            grid=(steps,),
            in_specs=[
                pl.BlockSpec((TMr, W), lambda i: (i, 0)),            # x rows, lane-dense
                pl.BlockSpec((W, KNH), lambda i: (0, 0)),            # grid-invariant constants
                pl.BlockSpec((1, KNH), lambda i: (0, 0)),
                pl.BlockSpec((KNH, KN), lambda i: (0, 0)),
                pl.BlockSpec((nsteps, KN, KN), lambda i: (0, 0, 0)),
                pl.BlockSpec((KN, KN), lambda i: (0, 0)),
                pl.BlockSpec((KN, W), lambda i: (0, 0)),
                pl.BlockSpec((W, KD), lambda i: (0, 0)),
            ],
            out_specs=pl.BlockSpec((TMr, KD), lambda i: (i, 0)),     # >=128-lane out block
        ),
        compiler_params=pltpu.CompilerParams(
            dimension_semantics=("parallel",),                        # megacore sharding
            vmem_limit_bytes=vmem_limit,
        ),
    )(xf, w1bd, b1t, w2bd, rot, gmat, rexp, gsum)

    if pad:
        out = out[:Mr]
    # (Mr, k*D) -> (B, S, D): row-major unfold of the lane packing (free reshape).
    return out.reshape(B, S, D)


def _reference(x, w1, b1, w2, b2):
    # Pure-JAX reference mirroring the PyTorch forward.
    h = jnp.maximum(jnp.einsum('bsnd,dh->bsnh', x, w1) + b1, 0.0)
    s = (jnp.einsum('bsnh,ho->bsno', h, w2) + b2)[..., 0]
    w = jax.nn.softmax(s, axis=-1)
    return jnp.einsum('bsnd,bsn->bsd', x, w)


if __name__ == "__main__":
    B, S, N, D = 2, 64, 4, 32
    H = D // 2

    key = jax.random.PRNGKey(0)
    kx, k1, k2, k3, k4 = jax.random.split(key, 5)

    x = jax.random.normal(kx, (B, S, N, D), dtype=jnp.float32)
    # deterministic "Linear" params, stored as (in, out)
    w1 = jax.random.normal(k1, (D, H), dtype=jnp.float32) * (1.0 / jnp.sqrt(D))
    b1 = jax.random.normal(k2, (H,), dtype=jnp.float32) * 0.01
    w2 = jax.random.normal(k3, (H, 1), dtype=jnp.float32) * (1.0 / jnp.sqrt(H))
    b2 = jax.random.normal(k4, (1,), dtype=jnp.float32) * 0.01

    out = weighted_sum_aggregation(x, w1, b1, w2, b2)
    out = jax.block_until_ready(out)

    ref = _reference(x, w1, b1, w2, b2)
    assert out.shape == (B, S, D)

    # Tolerance: pl.reciprocal(approx=True) (~2^-12 rel) + MXU f32 rounding; wider
    # only when the v5e bf16 score path is active.
    tol = 3e-2 if _use_bf16_scores(x.dtype) else 5e-3
    err = float(jnp.max(jnp.abs(out - ref)))
    assert jnp.allclose(out, ref, atol=tol, rtol=tol), err

    print("KERNEL_OK")
</pallas_src>

<mosaic_0001>
module attributes {stable_mosaic.version = 11 : i64} {
  func.func @_wsa_kernel(%arg0: i32, %arg1: memref<16x512xf32, #tpu.memory_space<vmem>>, %arg2: memref<512x256xf32, #tpu.memory_space<vmem>>, %arg3: memref<1x256xf32, #tpu.memory_space<vmem>>, %arg4: memref<256x16xf32, #tpu.memory_space<vmem>>, %arg5: memref<2x16x16xf32, #tpu.memory_space<vmem>>, %arg6: memref<16x16xf32, #tpu.memory_space<vmem>>, %arg7: memref<16x512xf32, #tpu.memory_space<vmem>>, %arg8: memref<512x128xf32, #tpu.memory_space<vmem>>, %arg9: memref<16x128xf32, #tpu.memory_space<vmem>>) attributes {dimension_semantics = [#tpu.dimension_semantics<parallel>], iteration_bounds = array<i64: 2>, scalar_prefetch = 0 : i64, scratch_operands = 0 : i64, tpu.core_type = #tpu.core_type<tc>, window_params = [{transform_indices = @transform_0, window_bounds = array<i64: 16, 512>}, {pipeline_mode = #tpu.pipeline_mode<synchronous>, transform_indices = @transform_1, window_bounds = array<i64: 512, 256>}, {pipeline_mode = #tpu.pipeline_mode<synchronous>, transform_indices = @transform_2, window_bounds = array<i64: 1, 256>}, {pipeline_mode = #tpu.pipeline_mode<synchronous>, transform_indices = @transform_3, window_bounds = array<i64: 256, 16>}, {pipeline_mode = #tpu.pipeline_mode<synchronous>, transform_indices = @transform_4, window_bounds = array<i64: 2, 16, 16>}, {pipeline_mode = #tpu.pipeline_mode<synchronous>, transform_indices = @transform_5, window_bounds = array<i64: 16, 16>}, {pipeline_mode = #tpu.pipeline_mode<synchronous>, transform_indices = @transform_6, window_bounds = array<i64: 16, 512>}, {pipeline_mode = #tpu.pipeline_mode<synchronous>, transform_indices = @transform_7, window_bounds = array<i64: 512, 128>}, {transform_indices = @transform_8, window_bounds = array<i64: 16, 128>}]} {
    %c0 = arith.constant 0 : index
    %c0_0 = arith.constant 0 : index
    %0 = vector.load %arg1[%c0, %c0_0] : memref<16x512xf32, #tpu.memory_space<vmem>>, vector<16x512xf32>
    %c0_1 = arith.constant 0 : index
    %c0_2 = arith.constant 0 : index
    %1 = vector.load %arg2[%c0_1, %c0_2] : memref<512x256xf32, #tpu.memory_space<vmem>>, vector<512x256xf32>
    %cst = arith.constant dense<0.000000e+00> : vector<16x256xf32>
    %2 = tpu.matmul %0, %1, %cst {dimension_numbers = #tpu.dot_dimension_numbers<[1], [0], [0], [1], [0, 0, 1, 1], [], []>} : vector<16x512xf32>, vector<512x256xf32>, vector<16x256xf32> -> vector<16x256xf32>
    %c0_3 = arith.constant 0 : index
    %c0_4 = arith.constant 0 : index
    %3 = vector.load %arg3[%c0_3, %c0_4] : memref<1x256xf32, #tpu.memory_space<vmem>>, vector<1x256xf32>
    %4 = vector.broadcast %3 : vector<1x256xf32> to vector<16x256xf32>
    %5 = arith.addf %2, %4 : vector<16x256xf32>
    %cst_5 = arith.constant 0.000000e+00 : f32
    %6 = vector.broadcast %cst_5 : f32 to vector<16x256xf32>
    %7 = arith.maximumf %5, %6 : vector<16x256xf32>
    %c0_6 = arith.constant 0 : index
    %c0_7 = arith.constant 0 : index
    %8 = vector.load %arg4[%c0_6, %c0_7] : memref<256x16xf32, #tpu.memory_space<vmem>>, vector<256x16xf32>
    %cst_8 = arith.constant dense<0.000000e+00> : vector<16x16xf32>
    %9 = tpu.matmul %7, %8, %cst_8 {dimension_numbers = #tpu.dot_dimension_numbers<[1], [0], [0], [1], [0, 0, 1, 1], [], []>} : vector<16x256xf32>, vector<256x16xf32>, vector<16x16xf32> -> vector<16x16xf32>
    %c0_9 = arith.constant 0 : index
    %c0_10 = arith.constant 0 : index
    %c0_11 = arith.constant 0 : index
    %10 = vector.load %arg5[%c0_9, %c0_10, %c0_11] : memref<2x16x16xf32, #tpu.memory_space<vmem>>, vector<1x16x16xf32>
    %11 = vector.shape_cast %10 : vector<1x16x16xf32> to vector<16x16xf32>
    %cst_12 = arith.constant dense<0.000000e+00> : vector<16x16xf32>
    %12 = tpu.matmul %9, %11, %cst_12 {dimension_numbers = #tpu.dot_dimension_numbers<[1], [0], [0], [1], [0, 0, 1, 1], [], []>} : vector<16x16xf32>, vector<16x16xf32>, vector<16x16xf32> -> vector<16x16xf32>
    %13 = arith.maximumf %9, %12 : vector<16x16xf32>
    %c1 = arith.constant 1 : index
    %c0_13 = arith.constant 0 : index
    %c0_14 = arith.constant 0 : index
    %14 = vector.load %arg5[%c1, %c0_13, %c0_14] : memref<2x16x16xf32, #tpu.memory_space<vmem>>, vector<1x16x16xf32>
    %15 = vector.shape_cast %14 : vector<1x16x16xf32> to vector<16x16xf32>
    %cst_15 = arith.constant dense<0.000000e+00> : vector<16x16xf32>
    %16 = tpu.matmul %13, %15, %cst_15 {dimension_numbers = #tpu.dot_dimension_numbers<[1], [0], [0], [1], [0, 0, 1, 1], [], []>} : vector<16x16xf32>, vector<16x16xf32>, vector<16x16xf32> -> vector<16x16xf32>
    %17 = arith.maximumf %13, %16 : vector<16x16xf32>
    %18 = arith.subf %9, %17 : vector<16x16xf32>
    %19 = math.exp %18 : vector<16x16xf32>
    %c0_16 = arith.constant 0 : index
    %c0_17 = arith.constant 0 : index
    %20 = vector.load %arg6[%c0_16, %c0_17] : memref<16x16xf32, #tpu.memory_space<vmem>>, vector<16x16xf32>
    %cst_18 = arith.constant dense<0.000000e+00> : vector<16x16xf32>
    %21 = tpu.matmul %19, %20, %cst_18 {dimension_numbers = #tpu.dot_dimension_numbers<[1], [0], [0], [1], [0, 0, 1, 1], [], []>} : vector<16x16xf32>, vector<16x16xf32>, vector<16x16xf32> -> vector<16x16xf32>
    %22 = tpu.reciprocal %21 {approx = true} : vector<16x16xf32> -> vector<16x16xf32>
    %23 = arith.mulf %19, %22 : vector<16x16xf32>
    %c0_19 = arith.constant 0 : index
    %c0_20 = arith.constant 0 : index
    %24 = vector.load %arg7[%c0_19, %c0_20] : memref<16x512xf32, #tpu.memory_space<vmem>>, vector<16x512xf32>
    %cst_21 = arith.constant dense<0.000000e+00> : vector<16x512xf32>
    %25 = tpu.matmul %23, %24, %cst_21 {dimension_numbers = #tpu.dot_dimension_numbers<[1], [0], [0], [1], [0, 0, 1, 1], [], []>} : vector<16x16xf32>, vector<16x512xf32>, vector<16x512xf32> -> vector<16x512xf32>
    %26 = arith.mulf %0, %25 : vector<16x512xf32>
    %c0_22 = arith.constant 0 : index
    %c0_23 = arith.constant 0 : index
    %27 = vector.load %arg8[%c0_22, %c0_23] : memref<512x128xf32, #tpu.memory_space<vmem>>, vector<512x128xf32>
    %cst_24 = arith.constant dense<0.000000e+00> : vector<16x128xf32>
    %28 = tpu.matmul %26, %27, %cst_24 {dimension_numbers = #tpu.dot_dimension_numbers<[1], [0], [0], [1], [0, 0, 1, 1], [], []>} : vector<16x512xf32>, vector<512x128xf32>, vector<16x128xf32> -> vector<16x128xf32>
    %c0_25 = arith.constant 0 : index
    %c0_26 = arith.constant 0 : index
    %29 = vector.load %arg9[%c0_25, %c0_26] : memref<16x128xf32, #tpu.memory_space<vmem>>, vector<16x128xf32>
    tpu.vector_store %arg9[%c0_25, %c0_26], %28 {strides = array<i32>} : memref<16x128xf32, #tpu.memory_space<vmem>>, vector<16x128xf32>,
    return
  }
  func.func @transform_0(%arg0: i32) -> (i32, i32) {
    %c0_i32 = arith.constant 0 : i32
    %c0_i32_0 = arith.constant 0 : i32
    return %arg0, %c0_i32 : i32, i32
  }
  func.func @transform_1(%arg0: i32) -> (i32, i32) {
    %c0_i32 = arith.constant 0 : i32
    %c0_i32_0 = arith.constant 0 : i32
    %c0_i32_1 = arith.constant 0 : i32
    return %c0_i32, %c0_i32_0 : i32, i32
  }
  func.func @transform_2(%arg0: i32) -> (i32, i32) {
    %c0_i32 = arith.constant 0 : i32
    %c0_i32_0 = arith.constant 0 : i32
    %c0_i32_1 = arith.constant 0 : i32
    return %c0_i32, %c0_i32_0 : i32, i32
  }
  func.func @transform_3(%arg0: i32) -> (i32, i32) {
    %c0_i32 = arith.constant 0 : i32
    %c0_i32_0 = arith.constant 0 : i32
    %c0_i32_1 = arith.constant 0 : i32
    return %c0_i32, %c0_i32_0 : i32, i32
  }
  func.func @transform_4(%arg0: i32) -> (i32, i32, i32) {
    %c0_i32 = arith.constant 0 : i32
    %c0_i32_0 = arith.constant 0 : i32
    %c0_i32_1 = arith.constant 0 : i32
    %c0_i32_2 = arith.constant 0 : i32
    return %c0_i32, %c0_i32_0, %c0_i32_1 : i32, i32, i32
  }
  func.func @transform_5(%arg0: i32) -> (i32, i32) {
    %c0_i32 = arith.constant 0 : i32
    %c0_i32_0 = arith.constant 0 : i32
    %c0_i32_1 = arith.constant 0 : i32
    return %c0_i32, %c0_i32_0 : i32, i32
  }
  func.func @transform_6(%arg0: i32) -> (i32, i32) {
    %c0_i32 = arith.constant 0 : i32
    %c0_i32_0 = arith.constant 0 : i32
    %c0_i32_1 = arith.constant 0 : i32
    return %c0_i32, %c0_i32_0 : i32, i32
  }
  func.func @transform_7(%arg0: i32) -> (i32, i32) {
    %c0_i32 = arith.constant 0 : i32
    %c0_i32_0 = arith.constant 0 : i32
    %c0_i32_1 = arith.constant 0 : i32
    return %c0_i32, %c0_i32_0 : i32, i32
  }
  func.func @transform_8(%arg0: i32) -> (i32, i32) {
    %c0_i32 = arith.constant 0 : i32
    %c0_i32_0 = arith.constant 0 : i32
    return %arg0, %c0_i32 : i32, i32
  }
}

</mosaic_0001>

<bundles_post_ra>
// kernel: tpu_custom_call.1
= control target key start
LH: loop header
LB: loop body
LE: loop exit
PB: predicated region body
PF: predicated region fallthrough
CT: control target
= control target key end

     0   :  { %13 = vsyncpa [#allocation3], 0  ;;  %s2563_s0 = inlined_call_operand.vmem [shape: f32[32,512], index: 0, kind: input, shape index: {}]   ;;  %s2564_s1 = inlined_call_operand.hbm [shape: f32[512,256], index: 1, kind: input, shape index: {}]   ;;  %s2565_s2 = inlined_call_operand.vmem [shape: f32[1,256], index: 2, kind: input, shape index: {}]   ;;  %s2566_s3 = inlined_call_operand.vmem [shape: f32[256,16], index: 3, kind: input, shape index: {}]   ;;  %s2567_s4 = inlined_call_operand.vmem [shape: f32[2,16,16], index: 4, kind: input, shape index: {}]   ;;  %s2568_s5 = inlined_call_operand.vmem [shape: f32[16,16], index: 5, kind: input, shape index: {}]   ;;  %s2569_s6 = inlined_call_operand.vmem [shape: f32[16,512], index: 6, kind: input, shape index: {}]   ;;  %s2570_s7 = inlined_call_operand.hbm [shape: f32[512,128], index: 7, kind: input, shape index: {}]   ;;  %s2571_s8 = inlined_call_operand.hbm [shape: f32[32,128], index: 8, kind: output, shape index: {}]  }
   0x1   :  { %14 = vsyncpa [#allocation6], 0 }
   0x2   :  { %15 = vsyncpa [#allocation4], 0 }
   0x3   :  { %17 = vsyncpa [#allocation4 + $0x1], 0  ;;  %s2196_s27 = smov 0   ;;  %s2198_s28 = smov 0  }
   0x4   :  { %s2200_s29 = smov 0   ;;  %s2202_s30 = smov 0  }
   0x5 LB: > { %2576 = sst [smem:[#allocation11_spill]] %s2135_s29  ;;  %s2217_s9 = sadd.s32 4294967295, %s2139_s30   ;;  %s2139_s30 = sphi %s2202_s30, %s2593_s30   ;;  %s2135_s29 = sphi %s2200_s29, %s2590_s29   ;;  %s2131_s28 = sphi %s2198_s28, %s2592_s28   ;;  %s2127_s27 = sphi %s2196_s27, %s2591_s27  }
   0x6   : > { %s1508_s10 = sadd.s32 4294967294, %s2139_s30   ;;  %s2221_s11 = sadd.s32 1, %s2139_s30  }
   0x7   : > { %s203_s12 = sadd.s32 1, %s2135_s29  ;;  %s200_s13 = ssub.s32 %s2139_s30, %s2221_s11 }
   0x8   : > { %p213_p0 = scmp.ne.s32.totalorder %s2135_s29, %s2131_s28  ;;  %p201_p1 = scmp.eq.s32.totalorder %s200_s13, 0 }
   0x9   : > { %p214_p2 = scmp.eq.s32.totalorder %s2217_s9, 1  ;;  %p219_p3 = scmp.ne.s32.totalorder %s2131_s28, %s2127_s27 }
   0xa   : > { %p220_p4 = scmp.eq.s32.totalorder %s1508_s10, 1  ;;  %p1509_p7 = scmp.ge.s32.totalorder %s2139_s30, 1 }
   0xb   : > { %s2232_s14 = scalar_select %p201_p1, %s2135_s29, %s203_s12  }
   0xc   : > { %p2234_p5 = por %p214_p2, %p213_p0  ;;  %p2238_p6 = por %p220_p4, %p219_p3 }
   0xd   : > { %2577 = sst [smem:[#allocation12_spill]] %s2232_s14  ;;  %p227_p8 = scmp.lt.s32.totalorder %s2139_s30, 3 }
   0xe   : > { %s2578_s15 = scalar_select %p2234_p5, 1, 0 }
   0xf   : > { %s2579_s16 = scalar_select %p2238_p6, 1, 0 }
  0x10   : > { %p2572_p9 = scmp.eq.s32.totalorder %s2217_s9, 0  ;;  %p2245_p10 = pnand %p1509_p7, %p227_p8 }
  0x11   : > { %s2141_s18 = smov [#allocation2]   ;;  %s2142_s21 = smov [#allocation5]  }
  0x12   : > { %s2580_s17 = scalar_select %p2245_p10, 1, 0 }
  0x13   : > { %s239_s19 = sshll.u32 %s2141_s18, 4  ;;  %p1948_p11 = pneg %p2245_p10  ;;  %s240_s19 = int_to_ptr.vmem [resolvable:$true] %s239_s19 }
  0x14   : > { %s267_s22 = sshll.u32 %s2142_s21, 4  ;;  %s2013_s25 = scalar_lea.hbm %s2564_s1, 16384  ;;  %s2257_s22 = int_to_ptr.vmem [resolvable:$true] %s267_s22 }
  0x15   : > { %p2253_p12 = pnand %p2572_p9, %p1948_p11  ;;  %p2014_p13 = scmp.ne.s32.totalorder %s2564_s1, %s2013_s25 }
  0x16   : > { %p2020_p3 = scmp.lt.u32.totalorder %s2013_s25, %s2564_s1 }
  0x17   : > { %p2015_p0 = pneg %p2253_p12 }
  0x19   : > { %p2016_p1 = pnand %p2015_p0, %p2014_p13 }
  0x1b   : > { %p2017_p2 = pneg %p2016_p1 }
  0x1d   : > { %p2022_p4 = pnand %p2020_p3, %p2017_p2 }
  0x1f   : > { %2025 = shalt.err (!%p2022_p4)
}
  0x20   : > { %s2026_s18 = scalar_lea.vmem %s240_s19, 16384  ;;  %p2034_p9 = scmp.lt.s32.totalorder %s240_s19, %s240_s19 }
  0x21   : > { %p2027_p7 = scmp.ne.s32.totalorder %s240_s19, %s2026_s18  ;;  %p2035_p6 = scmp.lt.s32.totalorder %s2026_s18, %s2026_s18 }
  0x23   : > { %p2029_p8 = pnand %p2027_p7, %p2015_p0  ;;  %p2036_p5 = por %p2035_p6, %p2034_p9 }
  0x25   : > { %p2030_p11 = pneg %p2029_p8 }
  0x27   : > { %p2037_p10 = pnand %p2036_p5, %p2030_p11 }
  0x29   : > { %2040 = shalt.err (!%p2037_p10)
}
  0x2a   : > { %s2143_s21 = smov 256   ;;  %s2144_s23 = smov 16  }
  0x2b   : > { %1951 = dma.hbm_to_vmem [thread:$0]  (!%p2253_p12), %s2564_s1, 16384, %s240_s19, [#allocation3], %s2143_s21, %s2143_s21, %s2144_s23  }
  0x2c   : > { %s2041_s12 = scalar_lea.hbm %s2570_s7, 8192 }
  0x2d   : > { %p2042_p13 = scmp.ne.s32.totalorder %s2570_s7, %s2041_s12  ;;  %p2048_p9 = scmp.lt.u32.totalorder %s2041_s12, %s2570_s7 }
  0x2f   : > { %p2044_p5 = pnand %p2042_p13, %p2015_p0 }
  0x31   : > { %p2045_p6 = pneg %p2044_p5 }
  0x33   : > { %p2050_p10 = pnand %p2048_p9, %p2045_p6 }
  0x35   : > { %2053 = shalt.err (!%p2050_p10)
}
  0x36   : > { %s2054_s19 = scalar_lea.vmem %s2257_s22, 8192  ;;  %p2062_p4 = scmp.lt.s32.totalorder %s2257_s22, %s2257_s22 }
  0x37   : > { %p2055_p1 = scmp.ne.s32.totalorder %s2257_s22, %s2054_s19  ;;  %p2063_p7 = scmp.lt.s32.totalorder %s2054_s19, %s2054_s19 }
  0x39   : > { %p2057_p2 = pnand %p2055_p1, %p2015_p0  ;;  %p2064_p8 = por %p2063_p7, %p2062_p4 }
  0x3b   : > { %p2058_p3 = pneg %p2057_p2 }
  0x3d   : > { %p2065_p11 = pnand %p2064_p8, %p2058_p3 }
  0x3f   : > { %2068 = shalt.err (!%p2065_p11)
}
  0x40   : > { %s2145_s29 = smov 128   ;;  %s2146_s14 = smov 8  }
  0x41   : > { %1954 = dma.hbm_to_vmem [thread:$0]  (!%p2253_p12), %s2570_s7, 8192, %s2257_s22, [#allocation6], %s2145_s29, %s2145_s29, %s2146_s14  }
  0x42   : > { %p2582_p13 = scmp.ne.s32.totalorder %s2580_s17, 0 }
  0x43   : > { %p2583_p0 = scmp.eq.s32.totalorder (!%p2582_p13), %s2217_s9, 0 }
  0x44   : > { %293 = sbr.rel (%p2582_p13) target bundleno = 1804 (0x70c), region = 52 }
  0x4b   : > { %2114 = dma.done.wait (%p2583_p0), [#allocation3], 16384   ;;  %p2584_p5 = pmov %p2583_p0 }
  0x4c   : > { %p2585_p6 = pmov %p2583_p0 }
  0x4d   : > { %2116 = vsyncadd (%p2584_p5), [#allocation3], 4294950912 }
  0x4e   : > { %2118 = dma.done.wait (%p2585_p6), [#allocation6], 8192   ;;  %p2586_p9 = pmov %p2583_p0 }
  0x4f   : > { %v349_v0 = vld [vmem:[#allocation2 + $0x8] sm:$0xff]  ;;  %v351_v1 = vld [vmem:[#allocation2 + $0x18] sm:$0xff]  ;;  %v348_v2 = vld [vmem:[#allocation2] sm:$0xff]  ;;  %s1517_s17 = sshll.u32 %s2217_s9, 1  ;;  %vm755_vm0 = vcmask 130048   ;;  %s329_s14 = sand.u32 1, %s2131_s28  }
  0x50   : > { %2120 = vsyncadd (%p2586_p9), [#allocation6], 4294959104  ;;  %v1686_v3 = vpack.c.bf16 %v351_v1, %v349_v0  ;;  %v350_v4 = vld [vmem:[#allocation2 + $0x10] sm:$0xff]  ;;  %v353_v5 = vld [vmem:[#allocation2 + $0x28] sm:$0xff]  ;;  %p333_p12 = scmp.lt.s32.totalorder %s1517_s17, 3  ;;  %s1516_s21 = sshll.u32 %s329_s14, 4 }
  0x51   : > { %v355_v6 = vld [vmem:[#allocation2 + $0x38] sm:$0xff]  ;;  %v1688_v7 = vpack.c.bf16 %v350_v4, %v348_v2  ;;  %v352_v9 = vld [vmem:[#allocation2 + $0x20] sm:$0xff]  ;;  %v354_v10 = vld [vmem:[#allocation2 + $0x30] sm:$0xff]  ;;  %s331_s23 = scalar_lea.vmem [#allocation7], %s1516_s21  ;;  %s2522_s10 = scalar_lea.sflag [#allocation4], %s329_s14 }
  0x52   : > { %v1690_v8 = vpack.c.bf16 %v355_v6, %v353_v5  ;;  %v357_v11 = vld [vmem:[#allocation2 + $0x48] sm:$0xff]  ;;  %1687 = vmatprep.subr.bf16.mxu0 %v1686_v3  ;;  %v359_v12 = vld [vmem:[#allocation2 + $0x58] sm:$0xff]  ;;  %v1692_v13 = vpack.c.bf16 %v354_v10, %v352_v9  ;;  %v356_v15 = vld [vmem:[#allocation2 + $0x40] sm:$0xff]  ;;  %s2595_s17 = smov (!%p333_p12, %s1517_s17), 3  ;;  %p2587_p1 = scmp.ne.s32.totalorder %s2578_s15, 0 }
  0x53   : > { %1689 = vmatpush1.bf16.msra.mxu0 %v1688_v7  ;;  %v1694_v14 = vpack.c.bf16 %v359_v12, %v357_v11  ;;  %v358_v16 = vld [vmem:[#allocation2 + $0x50] sm:$0xff]  ;;  %v361_v17 = vld [vmem:[#allocation2 + $0x68] sm:$0xff]  ;;  %v363_v18 = vld [vmem:[#allocation2 + $0x78] sm:$0xff]  ;;  %s1537_s20 = sshll.u32 %s2595_s17, 5  ;;  %s1424_s17 = sshll.u32 %s331_s23, 4  ;;  %s2515_s17 = int_to_ptr.vmem [resolvable:$true] %s1424_s17 }
  0x54   : > { %1691 = vmatprep.subr.bf16.mxu0 %v1690_v8  ;;  %v1696_v19 = vpack.c.bf16 %v358_v16, %v356_v15  ;;  %v1698_v20 = vpack.c.bf16 %v363_v18, %v361_v17  ;;  %v360_v21 = vld [vmem:[#allocation2 + $0x60] sm:$0xff]  ;;  %v362_v22 = vld [vmem:[#allocation2 + $0x70] sm:$0xff]  ;;  %v365_v23 = vld [vmem:[#allocation2 + $0x88] sm:$0xff]  ;;  %s2320_s25 = scalar_lea.vmem %s2563_s0, %s1537_s20  ;;  %s1538_s20 = sshll.u32 %s2217_s9, 8 }
  0x55   : > { %v367_v24 = vld [vmem:[#allocation2 + $0x98] sm:$0xff]  ;;  %v1700_v25 = vpack.c.bf16 %v362_v22, %v360_v21  ;;  %v364_v27 = vld [vmem:[#allocation2 + $0x80] sm:$0xff]  ;;  %v366_v28 = vld [vmem:[#allocation2 + $0x90] sm:$0xff]  ;;  %s2520_s26 = scalar_lea.hbm %s2571_s8, %s1538_s20  ;;  %s2069_s12 = scalar_lea.vmem %s2515_s17, 256 }
  0x56   : > { %v1702_v26 = vpack.c.bf16 %v367_v24, %v365_v23  ;;  %v369_v29 = vld [vmem:[#allocation2 + $0xa8] sm:$0xff]  ;;  %v371_v30 = vld [vmem:[#allocation2 + $0xb8] sm:$0xff]  ;;  %v1704_v31 = vpack.c.bf16 %v366_v28, %v364_v27  ;;  %v368_v33 = vld [vmem:[#allocation2 + $0xa0] sm:$0xff]  ;;  %p2070_p10 = scmp.ne.s32.totalorder %s2515_s17, %s2069_s12  ;;  %s2148_s9 = smov [#allocation7]  }
  0x57   : > { %1693 = vmatpush1.bf16.msra.mxu0 %v1692_v13  ;;  %v1706_v32 = vpack.c.bf16 %v371_v30, %v369_v29  ;;  %v370_v34 = vld [vmem:[#allocation2 + $0xb0] sm:$0xff]  ;;  %v373_v35 = vld [vmem:[#allocation2 + $0xc8] sm:$0xff]  ;;  %v375_v36 = vld [vmem:[#allocation2 + $0xd8] sm:$0xff]  ;;  %s2073_s13 = sshll.u32 %s2148_s9, 4  ;;  %s2074_s13 = int_to_ptr.vmem [resolvable:$false] %s2073_s13 }
  0x58   : > { %1695 = vmatprep.subr.bf16.mxu0 %v1694_v14  ;;  %v1708_v37 = vpack.c.bf16 %v370_v34, %v368_v33  ;;  %v1710_v38 = vpack.c.bf16 %v375_v36, %v373_v35  ;;  %v372_v39 = vld [vmem:[#allocation2 + $0xc0] sm:$0xff]  ;;  %v374_v40 = vld [vmem:[#allocation2 + $0xd0] sm:$0xff]  ;;  %v2323_v41 = vld [vmem:[%s2320_s25 + $0x8] sm:$0xff]  ;;  %p2071_p2 = pnand %p2070_p10, %p2587_p1  ;;  %p2076_p4 = scmp.lt.s32.totalorder %s2515_s17, %s2074_s13 }
  0x59   : > { %v377_v42 = vld [vmem:[#allocation2 + $0xe8] sm:$0xff]  ;;  %v379_v43 = vld [vmem:[#allocation2 + $0xf8] sm:$0xff]  ;;  %552 = vmatprep.mubr.f32.mxu0 %v2323_v41  ;;  %v1712_v44 = vpack.c.bf16 %v374_v40, %v372_v39  ;;  %v376_v46 = vld [vmem:[#allocation2 + $0xe0] sm:$0xff] }
  0x5a   : > { %v1714_v45 = vpack.c.bf16 %v379_v43, %v377_v42  ;;  %v378_v47 = vld [vmem:[#allocation2 + $0xf0] sm:$0xff]  ;;  %v381_v48 = vld [vmem:[#allocation2 + $0x108] sm:$0xff]  ;;  %v383_v49 = vld [vmem:[#allocation2 + $0x118] sm:$0xff]  ;;  %p2072_p3 = pneg %p2071_p2 }
  0x5b   : > { %1697 = vmatpush1.bf16.msra.mxu0 %v1696_v19  ;;  %v1716_v50 = vpack.c.bf16 %v378_v47, %v376_v46  ;;  %v1718_v51 = vpack.c.bf16 %v383_v49, %v381_v48  ;;  %v380_v52 = vld [vmem:[#allocation2 + $0x100] sm:$0xff]  ;;  %v382_v53 = vld [vmem:[#allocation2 + $0x110] sm:$0xff]  ;;  %v385_v54 = vld [vmem:[#allocation2 + $0x128] sm:$0xff] }
  0x5c   : > { %1699 = vmatprep.subr.bf16.mxu0 %v1698_v20  ;;  %v387_v55 = vld [vmem:[#allocation2 + $0x138] sm:$0xff]  ;;  %v1720_v56 = vpack.c.bf16 %v382_v53, %v380_v52  ;;  %v384_v58 = vld [vmem:[#allocation2 + $0x120] sm:$0xff]  ;;  %v386_v59 = vld [vmem:[#allocation2 + $0x130] sm:$0xff] }
  0x5d   : > { %v1722_v57 = vpack.c.bf16 %v387_v55, %v385_v54  ;;  %v389_v60 = vld [vmem:[#allocation2 + $0x148] sm:$0xff]  ;;  %v391_v61 = vld [vmem:[#allocation2 + $0x158] sm:$0xff]  ;;  %v1724_v62 = vpack.c.bf16 %v386_v59, %v384_v58  ;;  %v388_v0 = vld [vmem:[#allocation2 + $0x140] sm:$0xff] }
  0x5e   : > { %v1726_v63 = vpack.c.bf16 %v391_v61, %v389_v60  ;;  %v390_v1 = vld [vmem:[#allocation2 + $0x150] sm:$0xff]  ;;  %v393_v2 = vld [vmem:[#allocation2 + $0x168] sm:$0xff]  ;;  %v395_v3 = vld [vmem:[#allocation2 + $0x178] sm:$0xff] }
  0x5f   : > { %1701 = vmatpush1.bf16.msra.mxu0 %v1700_v25  ;;  %v1728_v4 = vpack.c.bf16 %v390_v1, %v388_v0  ;;  %v1730_v5 = vpack.c.bf16 %v395_v3, %v393_v2  ;;  %v392_v6 = vld [vmem:[#allocation2 + $0x160] sm:$0xff]  ;;  %v394_v7 = vld [vmem:[#allocation2 + $0x170] sm:$0xff]  ;;  %v397_v8 = vld [vmem:[#allocation2 + $0x188] sm:$0xff] }
  0x60   : > { %1703 = vmatprep.subr.bf16.mxu0 %v1702_v26  ;;  %v399_v9 = vld [vmem:[#allocation2 + $0x198] sm:$0xff]  ;;  %v1732_v10 = vpack.c.bf16 %v394_v7, %v392_v6  ;;  %v396_v11 = vld [vmem:[#allocation2 + $0x180] sm:$0xff]  ;;  %v398_v12 = vld [vmem:[#allocation2 + $0x190] sm:$0xff] }
  0x61   : > { %v401_v13 = vld [vmem:[#allocation2 + $0x1a8] sm:$0xff]  ;;  %v1734_v14 = vpack.c.bf16 %v399_v9, %v397_v8  ;;  %v403_v15 = vld [vmem:[#allocation2 + $0x1b8] sm:$0xff]  ;;  %v662_v16 = vld [vmem:[%s2566_s3 + $0x80] sm:$0xff]  ;;  %v1736_v26 = vpack.c.bf16 %v398_v12, %v396_v11 }
  0x62   : > { %v663_v17 = vld [vmem:[%s2566_s3 + $0x88] sm:$0xff]  ;;  %v646_v19 = vld [vmem:[%s2566_s3] sm:$0xff]  ;;  %v664_v21 = vld [vmem:[%s2566_s3 + $0x90] sm:$0xff]  ;;  %v1738_v30 = vpack.c.bf16 %v403_v15, %v401_v13 }
  0x63   : > { %1705 = vmatpush1.bf16.msra.mxu0 %v1704_v31  ;;  %v1814_v18 = vpack.c.bf16 %v663_v17, %v662_v16  ;;  %v647_v20 = vld [vmem:[%s2566_s3 + $0x8] sm:$0xff]  ;;  %v665_v23 = vld [vmem:[%s2566_s3 + $0x98] sm:$0xff]  ;;  %v648_v24 = vld [vmem:[%s2566_s3 + $0x10] sm:$0xff] }
  0x64   : > { %1707 = vmatprep.subr.bf16.mxu0 %v1706_v32  ;;  %v1816_v22 = vpack.c.bf16 %v647_v20, %v646_v19  ;;  %v649_v25 = vld [vmem:[%s2566_s3 + $0x18] sm:$0xff]  ;;  %v1818_v27 = vpack.c.bf16 %v665_v23, %v664_v21  ;;  %v666_v28 = vld [vmem:[%s2566_s3 + $0xa0] sm:$0xff]  ;;  %v667_v29 = vld [vmem:[%s2566_s3 + $0xa8] sm:$0xff] }
  0x65   : > { %1815 = vmatprep.subr.bf16.mxu1 %v1814_v18  ;;  %v400_v31 = vld [vmem:[#allocation2 + $0x1a0] sm:$0xff]  ;;  %v402_v32 = vld [vmem:[#allocation2 + $0x1b0] sm:$0xff]  ;;  %v405_v33 = vld [vmem:[#allocation2 + $0x1c8] sm:$0xff]  ;;  %v1820_v34 = vpack.c.bf16 %v649_v25, %v648_v24  ;;  %v1822_v36 = vpack.c.bf16 %v667_v29, %v666_v28 }
  0x66   : > { %1817 = vmatpush3.bf16.msra.mxu1 %v1816_v22  ;;  %v407_v35 = vld [vmem:[#allocation2 + $0x1d8] sm:$0xff]  ;;  %v668_v39 = vld [vmem:[%s2566_s3 + $0xb0] sm:$0xff]  ;;  %v1740_v42 = vpack.c.bf16 %v402_v32, %v400_v31  ;;  %v409_v46 = vld [vmem:[#allocation2 + $0x1e8] sm:$0xff] }
  0x67   : > { %1709 = vmatpush1.bf16.msra.mxu0 %v1708_v37  ;;  %1819 = vmatprep.subr.bf16.mxu1 %v1818_v27  ;;  %v650_v37 = vld [vmem:[%s2566_s3 + $0x20] sm:$0xff]  ;;  %v669_v40 = vld [vmem:[%s2566_s3 + $0xb8] sm:$0xff]  ;;  %v1742_v43 = vpack.c.bf16 %v407_v35, %v405_v33  ;;  %v671_v53 = vld [vmem:[%s2566_s3 + $0xc8] sm:$0xff] }
  0x68   : > { %1711 = vmatprep.subr.bf16.mxu0 %v1710_v38  ;;  %v651_v38 = vld [vmem:[%s2566_s3 + $0x28] sm:$0xff]  ;;  %v411_v48 = vld [vmem:[#allocation2 + $0x1f8] sm:$0xff]  ;;  %v1826_v49 = vpack.c.bf16 %v669_v40, %v668_v39  ;;  %v670_v52 = vld [vmem:[%s2566_s3 + $0xc0] sm:$0xff] }
  0x69   : > { %v1824_v47 = vpack.c.bf16 %v651_v38, %v650_v37  ;;  %v1746_v55 = vpack.c.bf16 %v411_v48, %v409_v46  ;;  %v413_v58 = vld [vmem:[#allocation2 + $0x208] sm:$0xff]  ;;  %v415_v60 = vld [vmem:[#allocation2 + $0x218] sm:$0xff]  ;;  %v1830_v61 = vpack.c.bf16 %v671_v53, %v670_v52  ;;  %v672_v0 = vld [vmem:[%s2566_s3 + $0xd0] sm:$0xff] }
  0x6a   : > { %1821 = vmatpush3.bf16.msra.mxu1 %v1820_v34  ;;  %v673_v1 = vld [vmem:[%s2566_s3 + $0xd8] sm:$0xff]  ;;  %v1750_v3 = vpack.c.bf16 %v415_v60, %v413_v58  ;;  %v417_v6 = vld [vmem:[#allocation2 + $0x228] sm:$0xff]  ;;  %v674_v12 = vld [vmem:[%s2566_s3 + $0xe0] sm:$0xff] }
  0x6b   : > { %1713 = vmatpush1.bf16.msra.mxu0 %v1712_v44  ;;  %v404_v44 = vld [vmem:[#allocation2 + $0x1c0] sm:$0xff]  ;;  %1823 = vmatprep.subr.bf16.mxu1 %v1822_v36  ;;  %v419_v8 = vld [vmem:[#allocation2 + $0x238] sm:$0xff]  ;;  %v1834_v9 = vpack.c.bf16 %v673_v1, %v672_v0  ;;  %v675_v13 = vld [vmem:[%s2566_s3 + $0xe8] sm:$0xff] }
  0x6c   : > { %1715 = vmatprep.subr.bf16.mxu0 %v1714_v45  ;;  %v406_v45 = vld [vmem:[#allocation2 + $0x1d0] sm:$0xff]  ;;  %v657_v11 = vld [vmem:[%s2566_s3 + $0x58] sm:$0xff]  ;;  %v1754_v16 = vpack.c.bf16 %v419_v8, %v417_v6  ;;  %v416_v17 = vld [vmem:[#allocation2 + $0x220] sm:$0xff]  ;;  %v1838_v23 = vpack.c.bf16 %v675_v13, %v674_v12 }
  0x6d   : > { %v1744_v54 = vpack.c.bf16 %v406_v45, %v404_v44  ;;  %v418_v18 = vld [vmem:[#allocation2 + $0x230] sm:$0xff]  ;;  %v2408_v19 = vld [vmem:[%s2320_s25 + $0x28] sm:$0xff]  ;;  %v423_v22 = vld [vmem:[#allocation2 + $0x258] sm:$0xff] }
  0x6e   : > { %1825 = vmatpush3.bf16.msra.mxu1 %v1824_v47  ;;  %v421_v21 = vld [vmem:[#allocation2 + $0x248] sm:$0xff]  ;;  %v1756_v24 = vpack.c.bf16 %v418_v18, %v416_v17  ;;  %v2413_v25 = vld [vmem:[%s2320_s25 + $0x20] sm:$0xff]  ;;  %v422_v28 = vld [vmem:[#allocation2 + $0x250] sm:$0xff] }
  0x6f   : > { %1717 = vmatpush1.bf16.msra.mxu0 %v1716_v50  ;;  %v652_v50 = vld [vmem:[%s2566_s3 + $0x30] sm:$0xff]  ;;  %1827 = vmatprep.subr.bf16.mxu1 %v1826_v49  ;;  %v420_v27 = vld [vmem:[#allocation2 + $0x240] sm:$0xff]  ;;  %v2416_v29 = vld [vmem:[%s2320_s25 + $0x18] sm:$0xff] }
  0x70   : > { %1719 = vmatprep.subr.bf16.mxu0 %v1718_v51  ;;  %v653_v51 = vld [vmem:[%s2566_s3 + $0x38] sm:$0xff]  ;;  %v1760_v32 = vpack.c.bf16 %v422_v28, %v420_v27  ;;  %v424_v34 = vld [vmem:[#allocation2 + $0x260] sm:$0xff]  ;;  %v426_v35 = vld [vmem:[#allocation2 + $0x270] sm:$0xff] }
  0x71   : > { %v1828_v59 = vpack.c.bf16 %v653_v51, %v652_v50  ;;  %v427_v31 = vld [vmem:[#allocation2 + $0x278] sm:$0xff]  ;;  %v429_v36 = vld [vmem:[#allocation2 + $0x288] sm:$0xff]  ;;  %v1764_v38 = vpack.c.bf16 %v426_v35, %v424_v34  ;;  %v428_v40 = vld [vmem:[#allocation2 + $0x280] sm:$0xff] }
  0x72   : > { %v431_v37 = vld [vmem:[#allocation2 + $0x298] sm:$0xff]  ;;  %v432_v47 = vld [vmem:[#allocation2 + $0x2a0] sm:$0xff]  ;;  %v434_v48 = vld [vmem:[#allocation2 + $0x2b0] sm:$0xff] }
  0x73   : > { %1721 = vmatpush1.bf16.msra.mxu0 %v1720_v56  ;;  %v408_v56 = vld [vmem:[#allocation2 + $0x1e0] sm:$0xff]  ;;  %1829 = vmatpush3.bf16.msra.mxu1 %v1828_v59  ;;  %v1766_v39 = vpack.c.bf16 %v431_v37, %v429_v36  ;;  %v435_v44 = vld [vmem:[#allocation2 + $0x2b8] sm:$0xff]  ;;  %v437_v49 = vld [vmem:[#allocation2 + $0x2c8] sm:$0xff]  ;;  %v1772_v51 = vpack.c.bf16 %v434_v48, %v432_v47 }
  0x74   : > { %1723 = vmatprep.subr.bf16.mxu0 %v1722_v57  ;;  %v410_v57 = vld [vmem:[#allocation2 + $0x1f0] sm:$0xff]  ;;  %1831 = vmatprep.subr.bf16.mxu1 %v1830_v61  ;;  %v439_v50 = vld [vmem:[#allocation2 + $0x2d8] sm:$0xff]  ;;  %v436_v53 = vld [vmem:[#allocation2 + $0x2c0] sm:$0xff] }
  0x75   : > { %v1748_v2 = vpack.c.bf16 %v410_v57, %v408_v56  ;;  %v1774_v52 = vpack.c.bf16 %v439_v50, %v437_v49  ;;  %v443_v56 = vld [vmem:[#allocation2 + $0x2f8] sm:$0xff]  ;;  %v440_v59 = vld [vmem:[#allocation2 + $0x2e0] sm:$0xff]  ;;  %v442_v60 = vld [vmem:[#allocation2 + $0x2f0] sm:$0xff] }
  0x76   : > { %v445_v61 = vld [vmem:[#allocation2 + $0x308] sm:$0xff]  ;;  %v444_v1 = vld [vmem:[#allocation2 + $0x300] sm:$0xff]  ;;  %v450_v8 = vld [vmem:[#allocation2 + $0x330] sm:$0xff] }
  0x77   : > { %1725 = vmatpush1.bf16.msra.mxu0 %v1724_v62  ;;  %v654_v62 = vld [vmem:[%s2566_s3 + $0x40] sm:$0xff]  ;;  %v459_v17 = vld [vmem:[#allocation2 + $0x378] sm:$0xff]  ;;  %v466_v36 = vld [vmem:[#allocation2 + $0x3b0] sm:$0xff] }
  0x78   : > { %1727 = vmatprep.subr.bf16.mxu0 %v1726_v63  ;;  %v655_v63 = vld [vmem:[%s2566_s3 + $0x48] sm:$0xff]  ;;  %v452_v13 = vld [vmem:[#allocation2 + $0x340] sm:$0xff]  ;;  %v474_v49 = vld [vmem:[#allocation2 + $0x3f0] sm:$0xff] }
  0x79   : > { %v1832_v7 = vpack.c.bf16 %v655_v63, %v654_v62  ;;  %v447_v62 = vld [vmem:[#allocation2 + $0x318] sm:$0xff]  ;;  %v1780_v63 = vpack.c.bf16 %v442_v60, %v440_v59  ;;  %v460_v28 = vld [vmem:[#allocation2 + $0x380] sm:$0xff]  ;;  %v469_v37 = vld [vmem:[#allocation2 + $0x3c8] sm:$0xff] }
  0x7a   : > { %v1782_v0 = vpack.c.bf16 %v447_v62, %v445_v61  ;;  %v464_v35 = vld [vmem:[#allocation2 + $0x3a0] sm:$0xff]  ;;  %v660_v60 = vld [vmem:[%s2566_s3 + $0x70] sm:$0xff]  ;;  %v661_v61 = vld [vmem:[%s2566_s3 + $0x78] sm:$0xff] }
  0x7b   : > { %1729 = vmatpush1.bf16.msra.mxu0 %v1728_v4  ;;  %v412_v4 = vld [vmem:[#allocation2 + $0x200] sm:$0xff]  ;;  %1833 = vmatpush3.bf16.msra.mxu1 %v1832_v7  ;;  %v1844_v62 = vpack.c.bf16 %v661_v61, %v660_v60  ;;  %v2147_v61 = vmov 0.0  }
  0x7c   : > { %1731 = vmatprep.subr.bf16.mxu0 %v1730_v5  ;;  %v414_v5 = vld [vmem:[#allocation2 + $0x210] sm:$0xff]  ;;  %1835 = vmatprep.subr.bf16.mxu1 %v1834_v9  ;;  %v448_v7 = vld [vmem:[#allocation2 + $0x320] sm:$0xff]  ;;  %v453_v9 = vld [vmem:[#allocation2 + $0x348] sm:$0xff] }
  0x7d   : > { %v1752_v15 = vpack.c.bf16 %v414_v5, %v412_v4  ;;  %v451_v4 = vld [vmem:[#allocation2 + $0x338] sm:$0xff]  ;;  %v472_v48 = vld [vmem:[#allocation2 + $0x3e0] sm:$0xff] }
  0x7e   : > { %v1812_v50 = vpack.c.bf16 %v474_v49, %v472_v48 }
  0x7f   : > { %1733 = vmatpush1.bf16.msra.mxu0 %v1732_v10  ;;  %v656_v10 = vld [vmem:[%s2566_s3 + $0x50] sm:$0xff] }
  0x80   : > { %1735 = vmatprep.subr.bf16.mxu0 %v1734_v14  ;;  %v2405_v14 = vld [vmem:[%s2320_s25] sm:$0xff]  ;;  %v1836_v20 = vpack.c.bf16 %v657_v11, %v656_v10  ;;  %v455_v10 = vld [vmem:[#allocation2 + $0x358] sm:$0xff]  ;;  %v1788_v11 = vpack.c.bf16 %v450_v8, %v448_v7 }
  0x81   : > { %v1790_v12 = vpack.c.bf16 %v455_v10, %v453_v9 }
  0x82   : > { %1837 = vmatpush3.bf16.msra.mxu1 %v1836_v20 }
  0x83   : > { %1737 = vmatpush1.bf16.msra.mxu0 %v1736_v26  ;;  %v1758_v26 = vpack.c.bf16 %v423_v22, %v421_v21  ;;  %1839 = vmatprep.subr.bf16.mxu1 %v1838_v23  ;;  %v456_v21 = vld [vmem:[#allocation2 + $0x360] sm:$0xff]  ;;  %v458_v22 = vld [vmem:[#allocation2 + $0x370] sm:$0xff]  ;;  %v461_v23 = vld [vmem:[#allocation2 + $0x388] sm:$0xff] }
  0x84   : > { %1739 = vmatprep.subr.bf16.mxu0 %v1738_v30  ;;  %v425_v30 = vld [vmem:[#allocation2 + $0x268] sm:$0xff] }
  0x85   : > { %v1762_v33 = vpack.c.bf16 %v427_v31, %v425_v30  ;;  %v462_v30 = vld [vmem:[#allocation2 + $0x390] sm:$0xff]  ;;  %v465_v31 = vld [vmem:[#allocation2 + $0x3a8] sm:$0xff] }
  0x87   : > { %1741 = vmatpush1.bf16.msra.mxu0 %v1740_v42  ;;  %v430_v42 = vld [vmem:[#allocation2 + $0x290] sm:$0xff] }
  0x88   : > { %1743 = vmatprep.subr.bf16.mxu0 %v1742_v43  ;;  %v433_v43 = vld [vmem:[#allocation2 + $0x2a8] sm:$0xff]  ;;  %v1768_v45 = vpack.c.bf16 %v430_v42, %v428_v40  ;;  %v468_v42 = vld [vmem:[#allocation2 + $0x3c0] sm:$0xff] }
  0x89   : > { %v1770_v46 = vpack.c.bf16 %v435_v44, %v433_v43  ;;  %v470_v43 = vld [vmem:[#allocation2 + $0x3d0] sm:$0xff]  ;;  %v473_v44 = vld [vmem:[#allocation2 + $0x3e8] sm:$0xff] }
  0x8b   : > { %1745 = vmatpush1.bf16.msra.mxu0 %v1744_v54  ;;  %v438_v54 = vld [vmem:[#allocation2 + $0x2d0] sm:$0xff] }
  0x8c   : > { %1747 = vmatprep.subr.bf16.mxu0 %v1746_v55  ;;  %v441_v55 = vld [vmem:[#allocation2 + $0x2e8] sm:$0xff]  ;;  %v1776_v57 = vpack.c.bf16 %v438_v54, %v436_v53  ;;  %v2429_v53 = vld [vmem:[%s2320_s25 + $0x30] sm:$0xff]  ;;  %v658_v54 = vld [vmem:[%s2566_s3 + $0x60] sm:$0xff] }
  0x8d   : > { %v1778_v58 = vpack.c.bf16 %v443_v56, %v441_v55  ;;  %v659_v55 = vld [vmem:[%s2566_s3 + $0x68] sm:$0xff] }
  0x8e   : > { %v1840_v56 = vpack.c.bf16 %v659_v55, %v658_v54  ;;  %v1019_v55 = vld [vmem:[%s2569_s6 + $0x8] sm:$0xff] }
  0x8f   : > { %1749 = vmatpush1.bf16.msra.mxu0 %v1748_v2  ;;  %v446_v2 = vld [vmem:[#allocation2 + $0x310] sm:$0xff] }
  0x90   : > { %1751 = vmatprep.subr.bf16.mxu0 %v1750_v3  ;;  %v449_v3 = vld [vmem:[#allocation2 + $0x328] sm:$0xff]  ;;  %v1784_v5 = vpack.c.bf16 %v446_v2, %v444_v1  ;;  %1841 = vmatpush3.bf16.msra.mxu1 %v1840_v56  ;;  %v478_v2 = vlaneseq }
  0x91   : > { %v1786_v6 = vpack.c.bf16 %v451_v4, %v449_v3  ;;  %v1023_v56 = vld [vmem:[%s2569_s6 + $0x28] sm:$0xff] }
  0x92   : > { %553 = vmatmul.mubr.f32.vlgmr.msra.gmra.mrb[0].mxu0 %v2405_v14  ;;  %v479_v3 = vshrl.u32 %v478_v2, 7 }
  0x93   : > { %1753 = vmatpush1.bf16.msra.mxu0 %v1752_v15  ;;  %558 = vmatprep.mubr.f32.mxu0 %v2408_v19  ;;  %v454_v15 = vld [vmem:[#allocation2 + $0x350] sm:$0xff] }
  0x94   : > { %1755 = vmatprep.subr.bf16.mxu0 %v1754_v16  ;;  %v457_v16 = vld [vmem:[#allocation2 + $0x368] sm:$0xff]  ;;  %v1792_v18 = vpack.c.bf16 %v454_v15, %v452_v13  ;;  %v480_v4 = vsub.s32 0, %v479_v3 }
  0x95   : > { %v1794_v20 = vpack.c.bf16 %v459_v17, %v457_v16 }
  0x96   : > { %559 = vmatmul.mubr.f32.gmra.mrb[2].mxu0 %v2413_v25 }
  0x97   : > { %1757 = vmatpush1.bf16.msra.mxu0 %v1756_v24  ;;  %629 = vmatprep.mubr.f32.mxu0 %v2416_v29  ;;  %v463_v24 = vld [vmem:[#allocation2 + $0x398] sm:$0xff] }
  0x98   : > { %1759 = vmatprep.subr.bf16.mxu0 %v1758_v26  ;;  %v1796_v26 = vpack.c.bf16 %v458_v22, %v456_v21  ;;  %v1798_v27 = vpack.c.bf16 %v463_v24, %v461_v23 }
  0x9b   : > { %1761 = vmatpush1.bf16.msra.mxu0 %v1760_v32  ;;  %v467_v32 = vld [vmem:[#allocation2 + $0x3b8] sm:$0xff] }
  0x9c   : > { %1763 = vmatprep.subr.bf16.mxu0 %v1762_v33  ;;  %v1800_v33 = vpack.c.bf16 %v462_v30, %v460_v28  ;;  %v1802_v34 = vpack.c.bf16 %v467_v32, %v465_v31  ;;  %v1522_v31 = vld [vmem:[%s2567_s4 + $0x10] sm:$0xff]  ;;  %v1523_v32 = vld [vmem:[%s2567_s4 + $0x18] sm:$0xff] }
  0x9f   : > { %1765 = vmatpush1.bf16.msra.mxu0 %v1764_v38  ;;  %v471_v38 = vld [vmem:[#allocation2 + $0x3d8] sm:$0xff] }
  0xa0   : > { %1767 = vmatprep.subr.bf16.mxu0 %v1766_v39  ;;  %v1804_v39 = vpack.c.bf16 %v466_v36, %v464_v35  ;;  %v1806_v40 = vpack.c.bf16 %v471_v38, %v469_v37  ;;  %v931_v38 = vld [vmem:[%s2568_s5] sm:$0xff] }
  0xa3   : > { %1769 = vmatpush1.bf16.msra.mxu0 %v1768_v45  ;;  %v475_v45 = vld [vmem:[#allocation2 + $0x3f8] sm:$0xff] }
  0xa4   : > { %1771 = vmatprep.subr.bf16.mxu0 %v1770_v46  ;;  %v1808_v46 = vpack.c.bf16 %v470_v43, %v468_v42  ;;  %v1810_v47 = vpack.c.bf16 %v475_v45, %v473_v44 }
  0xa7   : > { %1773 = vmatpush1.bf16.msra.mxu0 %v1772_v51  ;;  %v2421_v51 = vld [vmem:[%s2320_s25 + $0x10] sm:$0xff] }
  0xa8   : > { %1775 = vmatprep.subr.bf16.mxu0 %v1774_v52  ;;  %v2424_v52 = vld [vmem:[%s2320_s25 + $0x38] sm:$0xff]  ;;  %s2075_s25 = scalar_lea.vmem %s2074_s13, 512 }
  0xa9   : > { %p2077_p7 = scmp.lt.s32.totalorder %s2075_s25, %s2069_s12 }
  0xab   : > { %1777 = vmatpush1.bf16.msra.mxu0 %v1776_v57  ;;  %v676_v57 = vld [vmem:[%s2566_s3 + $0xf0] sm:$0xff]  ;;  %p2078_p8 = por %p2077_p7, %p2076_p4 }
  0xac   : > { %1779 = vmatprep.subr.bf16.mxu0 %v1778_v58  ;;  %v677_v58 = vld [vmem:[%s2566_s3 + $0xf8] sm:$0xff] }
  0xad   : > { %v1842_v59 = vpack.c.bf16 %v677_v58, %v676_v57  ;;  %v1858_v57 = vpack.c.bf16 %v1023_v56, %v1019_v55  ;;  %v1018_v58 = vld [vmem:[%s2569_s6] sm:$0xff]  ;;  %p2079_p11 = pnand %p2078_p8, %p2072_p3 }
  0xaf   : > { %1781 = vmatpush1.bf16.msra.mxu0 %v1780_v63  ;;  %1843 = vmatprep.subr.bf16.mxu1 %v1842_v59  ;;  %v753_v63 = vld [vmem:[%s2567_s4] sm:$0xff] }
  0xb0   : > { %1783 = vmatprep.subr.bf16.mxu0 %v1782_v0  ;;  %1845 = vmatpush3.bf16.msra.mxu1 %v1844_v62  ;;  %v754_v0 = vld [vmem:[%s2567_s4 + $0x8] sm:$0xff]  ;;  %v1022_v59 = vld [vmem:[%s2569_s6 + $0x20] sm:$0xff]  ;;  %v1021_v62 = vld [vmem:[%s2569_s6 + $0x18] sm:$0xff] }
  0xb1   : > { %v1846_v1 = vpack.c.bf16 %v754_v0, %v753_v63  ;;  %v1860_v60 = vpack.c.bf16 %v1022_v59, %v1018_v58  ;;  %v1025_v63 = vld [vmem:[%s2569_s6 + $0x38] sm:$0xff]  ;;  %v1207_v58 = vld [vmem:[#allocation5 + $0x68] sm:$0xff] }
  0xb2   : > { %v1862_v0 = vpack.c.bf16 %v1025_v63, %v1021_v62  ;;  %v1208_v63 = vld [vmem:[#allocation5 + $0x70] sm:$0xff] }
  0xb3   : > { %1785 = vmatpush1.bf16.msra.mxu0 %v1784_v5  ;;  %1847 = vmatprep.subr.bf16.mxu1 %v1846_v1  ;;  %v476_v5 = vld [vmem:[%s2565_s2] sm:$0x3] }
  0xb4   : > { %1787 = vmatprep.subr.bf16.mxu0 %v1786_v6  ;;  %v484_v6 = vsub.s32 1, %v479_v3  ;;  %v481_v7 = vrot.slane %v476_v5, %v480_v4  ;;  %v1020_v3 = vld [vmem:[%s2569_s6 + $0x10] sm:$0xff] }
  0xb5   : > { %v1024_v4 = vld [vmem:[%s2569_s6 + $0x30] sm:$0xff] }
  0xb6   : > { %v485_v8 = vrot.slane %v476_v5, %v484_v6  ;;  %v1210_v5 = vld [vmem:[#allocation5 + $0x80] sm:$0xff]  ;;  %v1211_v6 = vld [vmem:[#allocation5 + $0x88] sm:$0xff] }
  0xb7   : > { %1789 = vmatpush1.bf16.msra.mxu0 %v1788_v11 }
  0xb8   : > { %1791 = vmatprep.subr.bf16.mxu0 %v1790_v12 }
  0xbb   : > { %1793 = vmatpush1.bf16.msra.mxu0 %v1792_v18 }
  0xbc   : > { %1795 = vmatprep.subr.bf16.mxu0 %v1794_v20 }
  0xbf   : > { %1797 = vmatpush1.bf16.msra.mxu0 %v1796_v26 }
  0xc0   : > { %1799 = vmatprep.subr.bf16.mxu0 %v1798_v27 }
  0xc3   : > { %1801 = vmatpush1.bf16.msra.mxu0 %v1800_v33  ;;  %v1850_v33 = vpack.c.bf16 %v1523_v32, %v1522_v31  ;;  %v1216_v31 = vld [vmem:[#allocation5 + $0xb0] sm:$0xff]  ;;  %v1217_v32 = vld [vmem:[#allocation5 + $0xb8] sm:$0xff] }
  0xc4   : > { %1803 = vmatprep.subr.bf16.mxu0 %v1802_v34 }
  0xc7   : > { %1805 = vmatpush1.bf16.msra.mxu0 %v1804_v39  ;;  %v932_v39 = vld [vmem:[%s2568_s5 + $0x8] sm:$0xff] }
  0xc8   : > { %1807 = vmatprep.subr.bf16.mxu0 %v1806_v40  ;;  %v1854_v40 = vpack.c.bf16 %v932_v39, %v931_v38  ;;  %v1219_v38 = vld [vmem:[#allocation5 + $0xc8] sm:$0xff] }
  0xcb   : > { %1809 = vmatpush1.bf16.msra.mxu0 %v1808_v46 }
  0xcc   : > { %1811 = vmatprep.subr.bf16.mxu0 %v1810_v47 }
  0xcf   : > { %1813 = vmatpush1.bf16.msra.mxu0 %v1812_v50 }
  0xd2   : > { %630 = vmatmul.mubr.f32.vlgmr.msra.gmra.mrb[0].mxu0 %v2421_v51 }
  0xd3   : > { %635 = vmatprep.mubr.f32.mxu0 %v2424_v52 }
  0xd6   : > { %636 = vmatmul.mubr.f32.gmra.mrb[2].mxu0 %v2429_v53 }
 0x1a5   : > { %v631_v9 = vpop.f32.mrb[0].mxu0 }
 0x1a6   : > { %v1930_v10 = vadd.f32 %v631_v9, %v481_v7  ;;  %v633_v11 = vpop.f32.mrb[1].mxu0 }
 0x1a7   : > { %v1931_v12 = vadd.f32 %v633_v11, %v485_v8 }
 0x1a8   : > { %v642_v16 = vmax.f32 %v1930_v10, 0.0  ;;  %v1866_v10 = vpack.c.bf16 %v1211_v6, %v1210_v5  ;;  %v1226_v5 = vld [vmem:[#allocation5 + $0x100] sm:$0xff]  ;;  %v1227_v6 = vld [vmem:[#allocation5 + $0x108] sm:$0xff] }
 0x1a9   : > { %v637_v13 = vpop.f32.mrb[2].mxu0  ;;  %v643_v15 = vmax.f32 %v1931_v12, 0.0 }
 0x1aa   : > { %v1932_v17 = vadd.f32 %v637_v13, %v481_v7  ;;  %v639_v18 = vpop.f32.mrb[3].mxu0  ;;  %v1194_v13 = vld [vmem:[#allocation5] sm:$0xff] }
 0x1ab   : > { %v1933_v20 = vadd.f32 %v639_v18, %v485_v8  ;;  %742 = vmatprep.mubr.f32.mxu1 %v643_v15  ;;  %v1864_v8 = vpack.c.bf16 %v1024_v4, %v1020_v3  ;;  %v1195_v15 = vld [vmem:[#allocation5 + $0x8] sm:$0xff] }
 0x1ac   : > { %743 = vmatmul.mubr.f32.vlgmr.msra.gmra.mrb[0].mxu1 %v642_v16  ;;  %v644_v22 = vmax.f32 %v1932_v17, 0.0  ;;  %v1212_v16 = vld [vmem:[#allocation5 + $0x90] sm:$0xff]  ;;  %v1213_v17 = vld [vmem:[#allocation5 + $0x98] sm:$0xff]  ;;  %v1868_v18 = vpack.c.bf16 %v1195_v15, %v1194_v13  ;;  %v1243_v3 = vld [vmem:[#allocation5 + $0x188] sm:$0xff] }
 0x1ad   : > { %v645_v21 = vmax.f32 %v1933_v20, 0.0  ;;  %1849 = vmatpush3.bf16.msra.mxu1 %v1846_v1  ;;  %v1870_v20 = vpack.c.bf16 %v1213_v17, %v1212_v16  ;;  %v1228_v16 = vld [vmem:[#allocation5 + $0x110] sm:$0xff]  ;;  %v1229_v17 = vld [vmem:[#allocation5 + $0x118] sm:$0xff] }
 0x1ae   : > { %1851 = vmatprep.subr.bf16.mxu1 %v1850_v33 }
 0x1af   : > { %747 = vmatprep.mubr.f32.mxu1 %v645_v21  ;;  %v1196_v21 = vld [vmem:[#allocation5 + $0x10] sm:$0xff] }
 0x1b0   : > { %748 = vmatmul.mubr.f32.gmra.mrb[2].mxu1 %v644_v22  ;;  %v1197_v22 = vld [vmem:[#allocation5 + $0x18] sm:$0xff] }
 0x27f   : > { %v1571_v23 = vpop.f32.mrb[0].mxu1 }
 0x280   : > { %v1572_v24 = vpop.f32.mrb[1].mxu1 }
 0x281   : > { %v1573_v26 = vadd.f32 %v1572_v24, %v1571_v23  ;;  %v1214_v23 = vld [vmem:[#allocation5 + $0xa0] sm:$0xff]  ;;  %v1215_v24 = vld [vmem:[#allocation5 + $0xa8] sm:$0xff] }
 0x283   : > { %v1574_v27 = vpop.f32.mrb[2].mxu1  ;;  %1669 = vmatprep.mubr.msk.f32.mxu1 %vm755_vm0, %v1573_v26 }
 0x284   : > { %v1575_v28 = vpop.f32.mrb[3].mxu1 }
 0x285   : > { %v1576_v30 = vadd.f32 %v1575_v28, %v1574_v27  ;;  %v1874_v27 = vpack.c.bf16 %v1215_v24, %v1214_v23  ;;  %v1198_v28 = vld [vmem:[#allocation5 + $0x20] sm:$0xff]  ;;  %v1904_v24 = vpack.c.bf16 %v1229_v17, %v1228_v16 }
 0x287   : > { %1670 = vmatmul.mubr.msk.f32.vlgmr.msra.gmra.mrb[4].mxu1 %vm755_vm0, %v1576_v30 }
 0x288   : > { %1853 = vmatpush3.bf16.msra.mxu1 %v1850_v33 }
 0x289   : > { %1855 = vmatprep.subr.bf16.mxu1 %v1854_v40 }
 0x35a   : > { %v1671_v34 = vpop.f32.mrb[4].mxu1 }
 0x35b   : > { %v828_v35 = vpop.f32.mrb[5].mxu1  ;;  %v838_v37 = vmax.f32 %v1576_v30, %v1671_v34  ;;  %v1878_v34 = vpack.c.bf16 %v1217_v32, %v1216_v31  ;;  %v1249_v31 = vld [vmem:[#allocation5 + $0x1b8] sm:$0xff] }
 0x35c   : > { %v837_v36 = vmax.f32 %v1573_v26, %v828_v35  ;;  %v1200_v35 = vld [vmem:[#allocation5 + $0x30] sm:$0xff] }
 0x35e   : > { %1676 = vmatprep.mubr.msk.f32.mxu1 %vm755_vm0, %v837_v36 }
 0x35f   : > { %1677 = vmatmul.mubr.msk.f32.vlgmr.msra.gmra.mrb[6].mxu1 %vm755_vm0, %v838_v37 }
 0x360   : > { %1857 = vmatpush3.bf16.msra.mxu1 %v1854_v40 }
 0x361   : > { %1859 = vmatprep.subr.bf16.mxu1 %v1858_v57  ;;  %v1206_v57 = vld [vmem:[#allocation5 + $0x60] sm:$0xff] }
 0x362   : > { %v1892_v59 = vpack.c.bf16 %v1207_v58, %v1206_v57  ;;  %v1238_v57 = vld [vmem:[#allocation5 + $0x160] sm:$0xff]  ;;  %v1239_v58 = vld [vmem:[#allocation5 + $0x168] sm:$0xff] }
 0x432   : > { %v1678_v42 = vpop.f32.mrb[6].mxu1 }
 0x433   : > { %v924_v43 = vmax.f32 %v838_v37, %v1678_v42  ;;  %v914_v44 = vpop.f32.mrb[7].mxu1  ;;  %v1218_v37 = vld [vmem:[#allocation5 + $0xc0] sm:$0xff] }
 0x434   : > { %v923_v45 = vmax.f32 %v837_v36, %v914_v44  ;;  %v1201_v36 = vld [vmem:[#allocation5 + $0x38] sm:$0xff]  ;;  %v1882_v40 = vpack.c.bf16 %v1219_v38, %v1218_v37  ;;  %v1202_v42 = vld [vmem:[#allocation5 + $0x40] sm:$0xff]  ;;  %v1220_v44 = vld [vmem:[#allocation5 + $0xd0] sm:$0xff] }
 0x435   : > { %v926_v46 = vsub.f32 %v1576_v30, %v924_v43  ;;  %v1199_v30 = vld [vmem:[#allocation5 + $0x28] sm:$0xff]  ;;  %v1880_v39 = vpack.c.bf16 %v1201_v36, %v1200_v35  ;;  %v1232_v35 = vld [vmem:[#allocation5 + $0x130] sm:$0xff]  ;;  %v1233_v36 = vld [vmem:[#allocation5 + $0x138] sm:$0xff] }
 0x436   : > { %v925_v47 = vsub.f32 %v1573_v26, %v923_v45  ;;  %v1872_v26 = vpack.c.bf16 %v1197_v22, %v1196_v21  ;;  %v1876_v33 = vpack.c.bf16 %v1199_v30, %v1198_v28  ;;  %v1203_v43 = vld [vmem:[#allocation5 + $0x48] sm:$0xff]  ;;  %v1221_v45 = vld [vmem:[#allocation5 + $0xd8] sm:$0xff]  ;;  %v1248_v30 = vld [vmem:[#allocation5 + $0x1b0] sm:$0xff] }
 0x437   : > { %v929_v48 = vmul.f32 1.442695, %v926_v46  ;;  %v1884_v46 = vpack.c.bf16 %v1203_v43, %v1202_v42  ;;  %v1247_v21 = vld [vmem:[#allocation5 + $0x1a8] sm:$0xff]  ;;  %v1234_v43 = vld [vmem:[#allocation5 + $0x140] sm:$0xff] }
 0x438   : > { %v927_v49 = vmul.f32 1.442695, %v925_v47  ;;  %v1886_v47 = vpack.c.bf16 %v1221_v45, %v1220_v44  ;;  %v1231_v28 = vld [vmem:[#allocation5 + $0x128] sm:$0xff]  ;;  %v1252_v45 = vld [vmem:[#allocation5 + $0x1d0] sm:$0xff] }
 0x439   : > { %v1251_v38 = vld [vmem:[#allocation5 + $0x1c8] sm:$0xff] }
 0x43a   : > { %2005 = vpow2.f32 %v927_v49  ;;  %v1205_v49 = vld [vmem:[#allocation5 + $0x58] sm:$0xff]  ;;  %v1235_v44 = vld [vmem:[#allocation5 + $0x148] sm:$0xff] }
 0x43b   : > { %2007 = vpow2.f32 %v929_v48  ;;  %v1204_v48 = vld [vmem:[#allocation5 + $0x50] sm:$0xff] }
 0x43c   : > { %v1888_v55 = vpack.c.bf16 %v1205_v49, %v1204_v48  ;;  %v1236_v48 = vld [vmem:[#allocation5 + $0x150] sm:$0xff]  ;;  %v1237_v49 = vld [vmem:[#allocation5 + $0x158] sm:$0xff] }
 0x444   : > { %v2006_v50 = vpop.eup %2005 }
 0x445   : > { %v2008_v54 = vpop.eup %2007  ;;  %1683 = vmatprep.mubr.msk.f32.mxu1 %vm755_vm0, %v2006_v50 }
 0x446   : > { %1684 = vmatmul.mubr.msk.f32.vlgmr.msra.gmra.mrb[8].mxu1 %vm755_vm0, %v2008_v54 }
 0x447   : > { %1861 = vmatpush1.bf16.msra.mxu1 %v1860_v60  ;;  %1096 = vmatprep.mubr.f32.mxu1 %v2147_v61  ;;  %v1224_v60 = vld [vmem:[#allocation5 + $0xf0] sm:$0xff] }
 0x448   : > { %1863 = vmatprep.subr.bf16.mxu1 %v1862_v0  ;;  %v1209_v0 = vld [vmem:[#allocation5 + $0x78] sm:$0xff] }
 0x519   : > { %v1685_v1 = vpop.f32.mrb[8].mxu1 }
 0x51a   : > { %v1005_v2 = vpop.f32.mrb[9].mxu1 }
 0x51b   : > { %2009 = vrcp.f32 %v1005_v2  ;;  %v1242_v2 = vld [vmem:[#allocation5 + $0x180] sm:$0xff] }
 0x51c   : > { %2011 = vrcp.f32 %v1685_v1  ;;  %v1896_v1 = vpack.c.bf16 %v1209_v0, %v1208_v63  ;;  %v1898_v4 = vpack.c.bf16 %v1243_v3, %v1242_v2  ;;  %v1240_v63 = vld [vmem:[#allocation5 + $0x170] sm:$0xff]  ;;  %v1241_v0 = vld [vmem:[#allocation5 + $0x178] sm:$0xff] }
 0x525   : > { %v2010_v7 = vpop.eup %2009 }
 0x526   : > { %v1016_v9 = vmul.f32 %v2010_v7, %v2006_v50  ;;  %v2012_v11 = vpop.eup %2011  ;;  %v1222_v50 = vld [vmem:[#allocation5 + $0xe0] sm:$0xff] }
 0x527   : > { %v1017_v12 = vmul.f32 %v2012_v11, %v2008_v54  ;;  %v1223_v54 = vld [vmem:[#allocation5 + $0xe8] sm:$0xff] }
 0x528   : > { %1528 = vmatmul.mubr.msk.f32.vlgmr.msra.gmra.mrb[10].mxu1 %vm755_vm0, %v1016_v9  ;;  %v1890_v56 = vpack.c.bf16 %v1223_v54, %v1222_v50  ;;  %v1254_v50 = vld [vmem:[#allocation5 + $0x1e0] sm:$0xff]  ;;  %v1255_v54 = vld [vmem:[#allocation5 + $0x1e8] sm:$0xff] }
 0x529   : > { %1102 = vmatprep.mubr.f32.mxu1 %v2147_v61  ;;  %1865 = vmatpush1.bf16.msra.mxu1 %v1864_v8  ;;  %v1244_v8 = vld [vmem:[#allocation5 + $0x190] sm:$0xff] }
 0x52a   : > { %1867 = vmatprep.subr.bf16.mxu1 %v1866_v10 }
 0x52c   : > { %1529 = vmatmul.mubr.msk.f32.gmra.mrb[12].mxu1 %vm755_vm0, %v1017_v12 }
 0x52d   : > { %1173 = vmatprep.mubr.f32.mxu1 %v2147_v61 }
 0x530   : > { %1530 = vmatmul.mubr.msk.f32.vlgmr.msra.gmra.mrb[14].mxu1 %vm755_vm0, %v1016_v9  ;;  %v1245_v9 = vld [vmem:[#allocation5 + $0x198] sm:$0xff] }
 0x531   : > { %1179 = vmatprep.mubr.f32.mxu1 %v2147_v61  ;;  %1869 = vmatpush3.bf16.msra.mxu1 %v1868_v18  ;;  %v1225_v61 = vld [vmem:[#allocation5 + $0xf8] sm:$0xff]  ;;  %v1902_v15 = vpack.c.bf16 %v1245_v9, %v1244_v8 }
 0x532   : > { %1871 = vmatprep.subr.bf16.mxu1 %v1870_v20  ;;  %v1894_v62 = vpack.c.bf16 %v1225_v61, %v1224_v60  ;;  %v1246_v20 = vld [vmem:[#allocation5 + $0x1a0] sm:$0xff]  ;;  %v1257_v60 = vld [vmem:[#allocation5 + $0x1f8] sm:$0xff]  ;;  %v1924_v61 = vpack.c.bf16 %v1239_v58, %v1238_v57 }
 0x534   : > { %1531 = vmatmul.mubr.msk.f32.gmra.mrb[16].mxu1 %vm755_vm0, %v1017_v12  ;;  %v1900_v12 = vpack.c.bf16 %v1227_v6, %v1226_v5 }
 0x535   : > { %1873 = vmatpush3.bf16.msra.mxu1 %v1872_v26 }
 0x536   : > { %1875 = vmatprep.subr.bf16.mxu1 %v1874_v27  ;;  %v1230_v27 = vld [vmem:[#allocation5 + $0x120] sm:$0xff] }
 0x539   : > { %1877 = vmatpush3.bf16.msra.mxu1 %v1876_v33 }
 0x53a   : > { %1879 = vmatprep.subr.bf16.mxu1 %v1878_v34  ;;  %v1908_v34 = vpack.c.bf16 %v1231_v28, %v1230_v27 }
 0x53d   : > { %1881 = vmatpush3.bf16.msra.mxu1 %v1880_v39 }
 0x53e   : > { %1883 = vmatprep.subr.bf16.mxu1 %v1882_v40  ;;  %v1912_v40 = vpack.c.bf16 %v1233_v36, %v1232_v35 }
 0x541   : > { %1885 = vmatpush3.bf16.msra.mxu1 %v1884_v46  ;;  %v1253_v46 = vld [vmem:[#allocation5 + $0x1d8] sm:$0xff] }
 0x542   : > { %1887 = vmatprep.subr.bf16.mxu1 %v1886_v47  ;;  %v1918_v47 = vpack.c.bf16 %v1253_v46, %v1252_v45 }
 0x545   : > { %1889 = vmatpush3.bf16.msra.mxu1 %v1888_v55  ;;  %v1920_v55 = vpack.c.bf16 %v1237_v49, %v1236_v48 }
 0x546   : > { %1891 = vmatprep.subr.bf16.mxu1 %v1890_v56  ;;  %v1922_v56 = vpack.c.bf16 %v1255_v54, %v1254_v50 }
 0x549   : > { %1893 = vmatpush3.bf16.msra.mxu1 %v1892_v59  ;;  %v1256_v59 = vld [vmem:[#allocation5 + $0x1f0] sm:$0xff] }
 0x54a   : > { %1895 = vmatprep.subr.bf16.mxu1 %v1894_v62  ;;  %v1926_v62 = vpack.c.bf16 %v1257_v60, %v1256_v59 }
 0x54d   : > { %1897 = vmatpush3.bf16.msra.mxu1 %v1896_v1  ;;  %v1928_v1 = vpack.c.bf16 %v1241_v0, %v1240_v63 }
 0x54e   : > { %1899 = vmatprep.subr.bf16.mxu1 %v1898_v4 }
 0x5fb   : > { %v1098_v7 = vpop.f32.mrb[10].mxu1 }
 0x5fc   : > { %v1100_v10 = vpop.f32.mrb[11].mxu1  ;;  %v1186_v13 = vmul.f32 %v1098_v7, %v2405_v14 }
 0x5fd   : > { %v1187_v11 = vmul.f32 %v1100_v10, %v2323_v41  ;;  %v1906_v41 = vpack.c.bf16 %v1247_v21, %v1246_v20 }
 0x5ff   : > { %v1104_v18 = vpop.f32.mrb[12].mxu1  ;;  %1322 = vmatprep.mubr.f32.mxu1 %v1187_v11 }
 0x600   : > { %v1106_v22 = vpop.f32.mrb[13].mxu1  ;;  %1323 = vmatmul.mubr.f32.vlgmr.msra.gmra.mrb[18].mxu1 %v1186_v13  ;;  %v1190_v26 = vmul.f32 %v1104_v18, %v2413_v25  ;;  %v1250_v25 = vld [vmem:[#allocation5 + $0x1c0] sm:$0xff] }
 0x601   : > { %v1191_v23 = vmul.f32 %v1106_v22, %v2408_v19  ;;  %1901 = vmatpush3.bf16.msra.mxu1 %v1900_v12  ;;  %v1910_v19 = vpack.c.bf16 %v1249_v31, %v1248_v30  ;;  %v1914_v42 = vpack.c.bf16 %v1251_v38, %v1250_v25 }
 0x602   : > { %1903 = vmatprep.subr.bf16.mxu1 %v1902_v15 }
 0x603   : > { %v1175_v14 = vpop.f32.mrb[14].mxu1  ;;  %1327 = vmatprep.mubr.f32.mxu1 %v1191_v23 }
 0x604   : > { %v1177_v32 = vpop.f32.mrb[15].mxu1  ;;  %1328 = vmatmul.mubr.f32.gmra.mrb[20].mxu1 %v1190_v26  ;;  %v1188_v2 = vmul.f32 %v1175_v14, %v2421_v51 }
 0x605   : > { %v1189_v33 = vmul.f32 %v1177_v32, %v2416_v29  ;;  %1905 = vmatpush3.bf16.msra.mxu1 %v1904_v24  ;;  %v1916_v29 = vpack.c.bf16 %v1235_v44, %v1234_v43 }
 0x606   : > { %1907 = vmatprep.subr.bf16.mxu1 %v1906_v41 }
 0x607   : > { %v1181_v37 = vpop.f32.mrb[16].mxu1  ;;  %1397 = vmatprep.mubr.f32.mxu1 %v1189_v33 }
 0x608   : > { %v1183_v39 = vpop.f32.mrb[17].mxu1  ;;  %v1192_v4 = vmul.f32 %v1181_v37, %v2429_v53 }
 0x609   : > { %1909 = vmatpush3.bf16.msra.mxu1 %v1908_v34  ;;  %v1193_v3 = vmul.f32 %v1183_v39, %v2424_v52 }
 0x60a   : > { %1911 = vmatprep.subr.bf16.mxu1 %v1910_v19 }
 0x60d   : > { %1913 = vmatpush3.bf16.msra.mxu1 %v1912_v40 }
 0x60e   : > { %1915 = vmatprep.subr.bf16.mxu1 %v1914_v42 }
 0x611   : > { %1917 = vmatpush3.bf16.msra.mxu1 %v1916_v29 }
 0x612   : > { %1919 = vmatprep.subr.bf16.mxu1 %v1918_v47 }
 0x615   : > { %1921 = vmatpush3.bf16.msra.mxu1 %v1920_v55 }
 0x616   : > { %1923 = vmatprep.subr.bf16.mxu1 %v1922_v56 }
 0x619   : > { %1925 = vmatpush3.bf16.msra.mxu1 %v1924_v61 }
 0x61a   : > { %1927 = vmatprep.subr.bf16.mxu1 %v1926_v62 }
 0x61d   : > { %1929 = vmatpush3.bf16.msra.mxu1 %v1928_v1 }
 0x620   : > { %1398 = vmatmul.mubr.f32.vlgmr.msra.gmra.mrb[22].mxu1 %v1188_v2 }
 0x621   : > { %1402 = vmatprep.mubr.f32.mxu1 %v1193_v3 }
 0x624   : > { %1403 = vmatmul.mubr.f32.gmra.mrb[24].mxu1 %v1192_v4 }
 0x6d3   : > { %v1621_v5 = vpop.f32.mrb[18].mxu1 }
 0x6d4   : > { %v1622_v6 = vpop.f32.mrb[19].mxu1 }
 0x6d5   : > { %v1623_v7 = vadd.f32 %v1622_v6, %v1621_v5 }
 0x6d7   : > { %v1624_v8 = vpop.f32.mrb[20].mxu1 }
 0x6d8   : > { %v1625_v9 = vpop.f32.mrb[21].mxu1 }
 0x6d9   : > { %v1626_v10 = vadd.f32 %v1625_v9, %v1624_v8 }
 0x6f3   : > { %v1659_v11 = vpop.f32.mrb[22].mxu1 }
 0x6f4   : > { %v1660_v12 = vpop.f32.mrb[23].mxu1 }
 0x6f5   : > { %v1661_v13 = vadd.f32 %v1660_v12, %v1659_v11 }
 0x6f7   : > { %v1400_v51 = vadd.f32 %v1661_v13, %v1623_v7  ;;  %v1662_v52 = vpop.f32.mrb[24].mxu1 }
 0x6f8   : > { %v1663_v53 = vpop.f32.mrb[25].mxu1 }
 0x6f9   : > { %1408 = vst [vmem:[%s331_s23] sm:$0xff] %v1400_v51  ;;  %v1664_v15 = vadd.f32 %v1663_v53, %v1662_v52 }
 0x6fb   : > { %v1405_v16 = vadd.f32 %v1664_v15, %v1626_v10 }
 0x6fd   : > { %1409 = vst [vmem:[%s331_s23 + $0x8] sm:$0xff] %v1405_v16 }
 0x6fe   : > { %2082 = shalt.err (!%p2079_p11)
}
 0x6ff   : > { %s2083_s18 = scalar_lea.hbm %s2520_s26, 256  ;;  %s2087_s14 = scalar_lea.hbm %s2571_s8, 512 }
 0x700   : > { %p2084_p13 = scmp.ne.s32.totalorder %s2520_s26, %s2083_s18  ;;  %p2088_p6 = scmp.lt.u32.totalorder %s2520_s26, %s2571_s8 }
 0x701   : > { %p2089_p9 = scmp.lt.u32.totalorder %s2087_s14, %s2083_s18  ;;  %p2091_p10 = scmp.lt.u32.totalorder %s2083_s18, %s2520_s26 }
 0x702   : > { %p2085_p0 = pnand %p2084_p13, %p2587_p1 }
 0x703   : > { %p2090_p12 = por %p2089_p9, %p2088_p6 }
 0x704   : > { %p2086_p5 = pneg %p2085_p0 }
 0x705   : > { %p2092_p2 = por %p2091_p10, %p2090_p12 }
 0x707   : > { %p2093_p3 = pnand %p2092_p2, %p2086_p5 }
 0x709   : > { %2096 = shalt.err (!%p2093_p3)
}
 0x70a   : > { %s2149_s20 = smov 128   ;;  %s2150_s22 = smov 8  }
 0x70b   : > { %1946 = dma.vmem_to_hbm [thread:$0]  (%p2587_p1), %s2515_s17, 256, %s2520_s26, %s2522_s10, %s2149_s20, %s2149_s20, %s2150_s22  }
 0x70c PF: > { %p1963_p4 = scmp.ge.s32.totalorder %s2139_s30, 2  ;;  %s1439_s24 = sand.u32 1, %s2127_s27  }
 0x70d   : > { %p2588_p7 = scmp.ne.s32.totalorder %s2579_s16, 0  ;;  %s1440_s12 = scalar_lea.sflag [#allocation4], %s1439_s24 }
 0x70f   : > { %p1956_p8 = pnand %p1963_p4, %p2588_p7 }
 0x711   : > { %2122 = dma.done.wait (!%p1956_p8), %s1440_s12, 256  }
 0x712   : > { %2124 = vsyncadd (!%p1956_p8), %s1440_s12, 4294967040  ;;  %s2589_s9 = sld [smem:[#allocation11_spill]]  ;;  %s2590_s29 = sld [smem:[#allocation12_spill]] }
 0x713   : > { %p20_p11 = scmp.ge.s32.totalorder %s2221_s11, 4   ;;  %s2591_s27 = smov %s2131_s28 }
 0x714   : > { %s2593_s30 = smov %s2221_s11 }
 0x715   :  { %22 = sbr.rel (!%p20_p11) target bundleno = 5 (0x5), region = 97 }
 0x718   : > { %s2592_s28 = smov %s2589_s9 }
 0x71c   :  { %1445 = vsyncpa [#allocation3], 1 }
 0x71d   :  { %1447 = vsyncpa [#allocation3 + $0x1], 1 }
 0x71e   :  { %1448 = vsyncpa [#allocation6], 1 }
 0x71f   :  { %1449 = vsyncpa [#allocation4], 1 }
 0x720   :  { %1451 = vsyncpa [#allocation4 + $0x1], 1 }

</bundles_post_ra>
